<compile_context>
chip_gen: v6e
topology: v6e:2x2x1
jax: 0.10.0
libtpu: 0.0.40
codegen_flags: <defaults>
</compile_context>

<pallas_src>
import functools
import math

import jax
import jax.numpy as jnp
from jax.experimental import pallas as pl
from jax.experimental.pallas import tpu as pltpu


def _sdpa_kernel(*refs, scale, has_mask, exp_dtype):
    if has_mask:
        q_ref, k_ref, v_ref, m_ref, ctx_ref, attn_ref = refs
    else:
        q_ref, k_ref, v_ref, ctx_ref, attn_ref = refs
        m_ref = None

    q = q_ref[...]          # (bb, tq, D)   native dtype (no f32 upcast)
    k = k_ref[...]          # (bb, Lk, D)
    v = v_ref[...]          # (bb, Lk, Dv)

    # Apply the scale to q instead of to the (tq, Lk) f32 scores: Lk/D x fewer
    # VALU ops and one fewer full-size f32 intermediate.  Python-float scale
    # is weakly typed, so q keeps its dtype.
    if scale:   # matches torch `if scale:` truthiness (scale=0.0 == no scale)
        q = q * scale

    # scores = q @ k^T : contract on the feature dim directly (no explicit
    # k transpose materialized), f32 accumulation on the MXU.
    scores = jnp.einsum("bqd,bkd->bqk", q, k,
                        preferred_element_type=jnp.float32)   # (bb, tq, Lk)

    if has_mask:
        # masked_fill_(attn_mask, -inf); nonzero == masked.  Fully-masked rows
        # produce NaNs, matching torch's behavior.
        scores = jnp.where(m_ref[...] != 0, -jnp.inf, scores)

    # Numerically-stable softmax along the last dim.  The divide is an EUP
    # reciprocal; on EUP-bound generations with bf16 inputs the exp itself
    # runs in bf16 (exp_dtype) for ~2x EUP throughput.
    row_max = jnp.max(scores, axis=-1, keepdims=True)
    shifted = scores - row_max
    if exp_dtype == jnp.float32:
        p = jnp.exp(shifted)
        denom = jnp.sum(p, axis=-1, keepdims=True)
    else:
        p = jnp.exp(shifted.astype(exp_dtype))
        denom = jnp.sum(p.astype(jnp.float32), axis=-1, keepdims=True)
    inv = pl.reciprocal(denom, approx=True)

    # Single cast of the normalized probabilities; this value feeds both the
    # attention-output store and the second MXU matmul.
    attn = (p * inv).astype(v_ref.dtype)

    # Dropout(p=0.0) is the identity — nothing to do.
    attn_ref[...] = attn.astype(attn_ref.dtype)   # no-op convert if dtypes match

    ctx = jnp.einsum("bqk,bkd->bqd", attn, v,
                     preferred_element_type=jnp.float32)
    ctx_ref[...] = ctx.astype(ctx_ref.dtype)


def _device_kind():
    try:
        return jax.devices()[0].device_kind.lower()
    except Exception:
        return ""


def _vmem_capacity_bytes(kind):
    try:
        cap = pltpu.get_tpu_info().vmem_capacity_bytes
        if cap:
            return int(cap)
    except Exception:
        pass
    if "v7" in kind:
        return 64 * 1024 * 1024
    if "v5" in kind or "v6" in kind:
        return 128 * 1024 * 1024
    return 64 * 1024 * 1024    # unknown: be conservative


def _estimate_step_vmem(bb, tq, Lk, D, Dv, in_bytes, out_bytes, mask_bytes,
                        has_mask):
    """Per-grid-step VMEM estimate: double-buffered blocks + f32 intermediates."""
    blocks = 2 * bb * (
        tq * D * in_bytes          # q tile
        + Lk * D * in_bytes        # full-Lk k per batch
        + Lk * Dv * in_bytes       # full-Lk v per batch
        + tq * Dv * out_bytes      # ctx out tile
        + tq * Lk * out_bytes)     # attn out tile
    if has_mask:
        blocks += 2 * bb * tq * Lk * mask_bytes
    intermediates = 3 * bb * tq * Lk * 4   # scores / exp / normalized (f32-class)
    return blocks + intermediates


def scaled_dot_product_attention(q, k, v, scale=None, attn_mask=None,
                                 *, batch_block=None, q_block=None):
    """Pallas-backed equivalent of ScaledDotProductAttention.forward."""
    B, Lq, D = q.shape
    Bk, Lk, Dk = k.shape
    Bv, Lv, Dv = v.shape
    assert B == Bk == Bv and D == Dk and Lk == Lv

    has_mask = attn_mask is not None

    kind = _device_kind()
    vmem_cap = _vmem_capacity_bytes(kind)
    vmem_limit = int(vmem_cap * 0.85)      # explicit scoped-VMEM limit
    tile_budget = vmem_limit // 2          # headroom for compiler scratch/spill

    in_bytes = q.dtype.itemsize
    out_bytes = q.dtype.itemsize
    mask_bytes = 1

    # Fuse multiple batch elements per grid step when the per-batch problem is
    # tiny (amortizes per-step overhead), otherwise one batch per step.
    if batch_block is None:
        bb = B if (B * Lq <= 512 and Lk <= 2048) else 1
    else:
        bb = batch_block
    if bb < 1 or B % bb != 0:
        bb = 1

    def _pick_tq(bb_):
        cands = ([Lq] if Lq <= 512 else [])
        cands += [c for c in (512, 256, 128, 64, 32, 16, 8) if c < Lq]
        for c in cands:
            if _estimate_step_vmem(bb_, c, Lk, D, Dv, in_bytes, out_bytes,
                                   mask_bytes, has_mask) <= tile_budget:
                return c, True
        return cands[-1], False

    if q_block is not None:
        tq = min(q_block, Lq)
    else:
        tq, fits = _pick_tq(bb)
        if not fits and bb > 1:
            bb = 1
            tq, fits = _pick_tq(bb)
        # TODO(synk): if still not fitting (very long L_k), add an L_k grid
        # axis with online-softmax accumulators + a normalization pass for the
        # stored attention instead of keeping L_k fully resident.

    n_b = B // bb
    n_q = pl.cdiv(Lq, tq)

    # v7x has 2 TensorCores per chip; make sure the "parallel" grid has at
    # least 2 steps so neither core idles.
    if "v7" in kind and n_b * n_q < 2:
        if bb > 1:
            new_bb = bb // 2
            while new_bb > 1 and B % new_bb != 0:
                new_bb -= 1
            bb = max(1, new_bb)
            n_b = B // bb
        elif Lq > 8 and tq > 8:
            tq = max(8, ((tq // 2) + 7) // 8 * 8)
            n_q = pl.cdiv(Lq, tq)

    # bf16 exp only where the EUP has a bf16 path (v6e/v7x) and the inputs are
    # already bf16; v5e and f32 inputs keep the f32 exp.
    exp_dtype = (jnp.bfloat16
                 if (q.dtype == jnp.bfloat16 and "v5" not in kind)
                 else jnp.float32)

    kernel = functools.partial(_sdpa_kernel, scale=scale, has_mask=has_mask,
                               exp_dtype=exp_dtype)

    in_specs = [
        pl.BlockSpec((bb, tq, D), lambda b, i: (b, i, 0)),    # q tile
        pl.BlockSpec((bb, Lk, D), lambda b, i: (b, 0, 0)),    # full k per batch
        pl.BlockSpec((bb, Lk, Dv), lambda b, i: (b, 0, 0)),   # full v per batch
    ]
    inputs = [q, k, v]
    if has_mask:
        # int8/uint8 masks pass straight through (no extra full-mask HBM
        # read+write in the wrapper).  Callers with bool/float masks pay one
        # conversion pass; supply int8 to avoid it.
        if attn_mask.dtype in (jnp.int8, jnp.uint8):
            mask = attn_mask
        else:
            mask = (attn_mask != 0).astype(jnp.int8)
        in_specs.append(pl.BlockSpec((bb, tq, Lk), lambda b, i: (b, i, 0)))
        inputs.append(mask)

    out_specs = [
        pl.BlockSpec((bb, tq, Dv), lambda b, i: (b, i, 0)),   # context
        pl.BlockSpec((bb, tq, Lk), lambda b, i: (b, i, 0)),   # attention
    ]
    out_shape = (
        jax.ShapeDtypeStruct((B, Lq, Dv), q.dtype),
        jax.ShapeDtypeStruct((B, Lq, Lk), q.dtype),           # attn in input dtype
    )

    ctx, attn = pl.pallas_call(
        kernel,
        out_shape=out_shape,
        grid_spec=pltpu.PrefetchScalarGridSpec(
            num_scalar_prefetch=0,
            grid=(n_b, n_q),
            in_specs=in_specs,
            out_specs=out_specs,
        ),
        compiler_params=pltpu.CompilerParams(
            dimension_semantics=("parallel", "parallel"),
            vmem_limit_bytes=vmem_limit,
        ),
    )(*inputs)
    return ctx, attn


def _reference(q, k, v, scale=None, attn_mask=None):
    scores = jnp.einsum("bqd,bkd->bqk", q, k,
                        preferred_element_type=jnp.float32)
    if scale:
        scores = scores * scale
    if attn_mask is not None:
        scores = jnp.where(attn_mask != 0, -jnp.inf, scores)
    attn = jax.nn.softmax(scores, axis=-1)
    ctx = jnp.einsum("bqk,bkd->bqd", attn.astype(v.dtype), v,
                     preferred_element_type=jnp.float32)
    return ctx.astype(q.dtype), attn.astype(q.dtype)


if __name__ == "__main__":
    key = jax.random.PRNGKey(0)
    B, Lq, Lk, D, Dv = 2, 8, 8, 32, 32

    kq, kk, kv, km = jax.random.split(key, 4)
    q = jax.random.normal(kq, (B, Lq, D), dtype=jnp.float32)
    k = jax.random.normal(kk, (B, Lk, D), dtype=jnp.float32)
    v = jax.random.normal(kv, (B, Lk, Dv), dtype=jnp.float32)
    # Random mask; keep last column unmasked so no row is fully masked.
    # Supplied as int8 so the wrapper passes it through with zero extra
    # HBM traffic.
    mask_bool = jax.random.bernoulli(km, 0.25, (B, Lq, Lk))
    mask_bool = mask_bool.at[:, :, -1].set(False)
    attn_mask = mask_bool.astype(jnp.int8)

    scale = 1.0 / math.sqrt(D)

    # Masked path.
    ctx, attn = scaled_dot_product_attention(q, k, v, scale=scale,
                                             attn_mask=attn_mask)
    jax.block_until_ready((ctx, attn))
    ctx_ref, attn_ref = _reference(q, k, v, scale=scale, attn_mask=attn_mask)
    assert jnp.allclose(ctx, ctx_ref, atol=2e-2, rtol=2e-2), "context mismatch"
    assert jnp.allclose(attn, attn_ref, atol=2e-2, rtol=2e-2), "attention mismatch"

    # Mask-free path (separate kernel variant, no mask input stream).
    ctx2, attn2 = scaled_dot_product_attention(q, k, v, scale=scale)
    jax.block_until_ready((ctx2, attn2))
    ctx_ref2, attn_ref2 = _reference(q, k, v, scale=scale)
    assert jnp.allclose(ctx2, ctx_ref2, atol=2e-2, rtol=2e-2), "context mismatch (no mask)"
    assert jnp.allclose(attn2, attn_ref2, atol=2e-2, rtol=2e-2), "attention mismatch (no mask)"

    print("KERNEL_OK")
</pallas_src>

<mosaic_0001>
module attributes {stable_mosaic.version = 11 : i64} {
  func.func @_sdpa_kernel(%arg0: i32, %arg1: i32, %arg2: memref<2x8x32xf32, #tpu.memory_space<vmem>>, %arg3: memref<2x8x32xf32, #tpu.memory_space<vmem>>, %arg4: memref<2x8x32xf32, #tpu.memory_space<vmem>>, %arg5: memref<2x8x8xi8, #tpu.memory_space<vmem>>, %arg6: memref<2x8x32xf32, #tpu.memory_space<vmem>>, %arg7: memref<2x8x8xf32, #tpu.memory_space<vmem>>) attributes {dimension_semantics = [#tpu.dimension_semantics<parallel>, #tpu.dimension_semantics<parallel>], iteration_bounds = array<i64: 1, 1>, scalar_prefetch = 0 : i64, scratch_operands = 0 : i64, tpu.core_type = #tpu.core_type<tc>, window_params = [{transform_indices = @transform_0, window_bounds = array<i64: 2, 8, 32>}, {transform_indices = @transform_1, window_bounds = array<i64: 2, 8, 32>}, {transform_indices = @transform_2, window_bounds = array<i64: 2, 8, 32>}, {transform_indices = @transform_3, window_bounds = array<i64: 2, 8, 8>}, {transform_indices = @transform_4, window_bounds = array<i64: 2, 8, 32>}, {transform_indices = @transform_5, window_bounds = array<i64: 2, 8, 8>}]} {
    %c0 = arith.constant 0 : index
    %c0_0 = arith.constant 0 : index
    %c0_1 = arith.constant 0 : index
    %0 = vector.load %arg2[%c0, %c0_0, %c0_1] : memref<2x8x32xf32, #tpu.memory_space<vmem>>, vector<2x8x32xf32>
    %c0_2 = arith.constant 0 : index
    %c0_3 = arith.constant 0 : index
    %c0_4 = arith.constant 0 : index
    %1 = vector.load %arg3[%c0_2, %c0_3, %c0_4] : memref<2x8x32xf32, #tpu.memory_space<vmem>>, vector<2x8x32xf32>
    %c0_5 = arith.constant 0 : index
    %c0_6 = arith.constant 0 : index
    %c0_7 = arith.constant 0 : index
    %2 = vector.load %arg4[%c0_5, %c0_6, %c0_7] : memref<2x8x32xf32, #tpu.memory_space<vmem>>, vector<2x8x32xf32>
    %cst = arith.constant 0.176776692 : f32
    %3 = vector.broadcast %cst : f32 to vector<2x8x32xf32>
    %4 = arith.mulf %0, %3 : vector<2x8x32xf32>
    "tpu.trace_start"() <{level = 10 : i32, message = "bqd,bkd->bqk"}> : () -> ()
    %cst_8 = arith.constant dense<0.000000e+00> : vector<2x8x8xf32>
    %5 = tpu.matmul %4, %1, %cst_8 {dimension_numbers = #tpu.dot_dimension_numbers<[2], [2], [1], [1], [0, 0, 0, 1, 1, 1], [0], [0]>} : vector<2x8x32xf32>, vector<2x8x32xf32>, vector<2x8x8xf32> -> vector<2x8x8xf32>
    "tpu.trace_stop"() : () -> ()
    %c0_9 = arith.constant 0 : index
    %c0_10 = arith.constant 0 : index
    %c0_11 = arith.constant 0 : index
    %6 = vector.load %arg5[%c0_9, %c0_10, %c0_11] : memref<2x8x8xi8, #tpu.memory_space<vmem>>, vector<2x8x8xi8>
    %c0_i8 = arith.constant 0 : i8
    %7 = vector.broadcast %c0_i8 : i8 to vector<2x8x8xi8>
    %8 = arith.cmpi ne, %6, %7 : vector<2x8x8xi8>
    %cst_12 = arith.constant 0xFF800000 : f32
    %9 = vector.broadcast %cst_12 : f32 to vector<2x8x8xf32>
    %10 = arith.select %8, %9, %5 : vector<2x8x8xi1>, vector<2x8x8xf32>
    %cst_13 = arith.constant dense<0xFF800000> : vector<2x8xf32>
    %11 = vector.multi_reduction <maximumf>, %10, %cst_13 [2] : vector<2x8x8xf32> to vector<2x8xf32>
    %12 = vector.shape_cast %11 : vector<2x8xf32> to vector<2x8x1xf32>
    %13 = vector.broadcast %12 : vector<2x8x1xf32> to vector<2x8x8xf32>
    %14 = arith.subf %10, %13 : vector<2x8x8xf32>
    %15 = math.exp %14 : vector<2x8x8xf32>
    %cst_14 = arith.constant dense<0.000000e+00> : vector<2x8xf32>
    %16 = vector.multi_reduction <add>, %15, %cst_14 [2] : vector<2x8x8xf32> to vector<2x8xf32>
    %17 = vector.shape_cast %16 : vector<2x8xf32> to vector<2x8x1xf32>
    %18 = tpu.reciprocal %17 {approx = true} : vector<2x8x1xf32> -> vector<2x8x1xf32>
    %19 = vector.broadcast %18 : vector<2x8x1xf32> to vector<2x8x8xf32>
    %20 = arith.mulf %15, %19 : vector<2x8x8xf32>
    %c0_15 = arith.constant 0 : index
    %c0_16 = arith.constant 0 : index
    %c0_17 = arith.constant 0 : index
    %21 = vector.load %arg7[%c0_15, %c0_16, %c0_17] : memref<2x8x8xf32, #tpu.memory_space<vmem>>, vector<2x8x8xf32>
    tpu.vector_store %arg7[%c0_15, %c0_16, %c0_17], %20 {strides = array<i32>} : memref<2x8x8xf32, #tpu.memory_space<vmem>>, vector<2x8x8xf32>,
    "tpu.trace_start"() <{level = 10 : i32, message = "bqk,bkd->bqd"}> : () -> ()
    %cst_18 = arith.constant dense<0.000000e+00> : vector<2x8x32xf32>
    %22 = tpu.matmul %20, %2, %cst_18 {dimension_numbers = #tpu.dot_dimension_numbers<[2], [1], [1], [2], [0, 0, 0, 1, 1, 2], [0], [0]>} : vector<2x8x8xf32>, vector<2x8x32xf32>, vector<2x8x32xf32> -> vector<2x8x32xf32>
    "tpu.trace_stop"() : () -> ()
    %c0_19 = arith.constant 0 : index
    %c0_20 = arith.constant 0 : index
    %c0_21 = arith.constant 0 : index
    %23 = vector.load %arg6[%c0_19, %c0_20, %c0_21] : memref<2x8x32xf32, #tpu.memory_space<vmem>>, vector<2x8x32xf32>
    tpu.vector_store %arg6[%c0_19, %c0_20, %c0_21], %22 {strides = array<i32>} : memref<2x8x32xf32, #tpu.memory_space<vmem>>, vector<2x8x32xf32>,
    return
  }
  func.func @transform_0(%arg0: i32, %arg1: i32) -> (i32, i32, i32) {
    %c0_i32 = arith.constant 0 : i32
    %c0_i32_0 = arith.constant 0 : i32
    return %arg0, %arg1, %c0_i32 : i32, i32, i32
  }
  func.func @transform_1(%arg0: i32, %arg1: i32) -> (i32, i32, i32) {
    %c0_i32 = arith.constant 0 : i32
    %c0_i32_0 = arith.constant 0 : i32
    %c0_i32_1 = arith.constant 0 : i32
    return %arg0, %c0_i32, %c0_i32_0 : i32, i32, i32
  }
  func.func @transform_2(%arg0: i32, %arg1: i32) -> (i32, i32, i32) {
    %c0_i32 = arith.constant 0 : i32
    %c0_i32_0 = arith.constant 0 : i32
    %c0_i32_1 = arith.constant 0 : i32
    return %arg0, %c0_i32, %c0_i32_0 : i32, i32, i32
  }
  func.func @transform_3(%arg0: i32, %arg1: i32) -> (i32, i32, i32) {
    %c0_i32 = arith.constant 0 : i32
    %c0_i32_0 = arith.constant 0 : i32
    return %arg0, %arg1, %c0_i32 : i32, i32, i32
  }
  func.func @transform_4(%arg0: i32, %arg1: i32) -> (i32, i32, i32) {
    %c0_i32 = arith.constant 0 : i32
    %c0_i32_0 = arith.constant 0 : i32
    return %arg0, %arg1, %c0_i32 : i32, i32, i32
  }
  func.func @transform_5(%arg0: i32, %arg1: i32) -> (i32, i32, i32) {
    %c0_i32 = arith.constant 0 : i32
    %c0_i32_0 = arith.constant 0 : i32
    return %arg0, %arg1, %c0_i32 : i32, i32, i32
  }
}

</mosaic_0001>

<bundles_post_ra>
// kernel: tpu_custom_call.1
= control target key start
LH: loop header
LB: loop body
LE: loop exit
PB: predicated region body
PF: predicated region fallthrough
CT: control target
= control target key end

     0   :  { %11 = vsyncpa [#allocation3], 0  ;;  %s698_s0 = inlined_call_operand.hbm [shape: f32[2,8,32], index: 0, kind: input, shape index: {}]   ;;  %s699_s1 = inlined_call_operand.hbm [shape: f32[2,8,32], index: 1, kind: input, shape index: {}]   ;;  %s700_s2 = inlined_call_operand.hbm [shape: f32[2,8,32], index: 2, kind: input, shape index: {}]   ;;  %s701_s3 = inlined_call_operand.vmem [shape: s8[2,8,8], index: 3, kind: input, shape index: {}]   ;;  %s702_s4 = inlined_call_operand.hbm [shape: f32[2,8,32], index: 4, kind: output, shape index: {0}]   ;;  %s703_s5 = inlined_call_operand.hbm [shape: f32[2,8,8], index: 5, kind: output, shape index: {1}]  }
   0x1   :  { %12 = vsyncpa [#allocation6], 0 }
   0x2   :  { %13 = vsyncpa [#allocation4], 0 }
   0x3   :  { %14 = vsyncpa [#allocation10], 0  ;;  %s604_s18 = smov [#allocation5]   ;;  %s605_s20 = smov [#allocation2]  }
   0x4   :  { %s32_s19 = sshll.u32 %s604_s18, 4  ;;  %s20_s21 = sshll.u32 %s605_s20, 4  ;;  %s33_s19 = int_to_ptr.vmem [resolvable:$true] %s32_s19  ;;  %s21_s21 = int_to_ptr.vmem [resolvable:$true] %s20_s21 }
   0x5   :  { %s504_s22 = scalar_lea.vmem %s33_s19, 256  ;;  %p509_p1 = scmp.lt.s32.totalorder %s33_s19, %s33_s19 }
   0x6   :  { %p505_p0 = scmp.ne.s32.totalorder %s33_s19, %s504_s22  ;;  %p510_p2 = scmp.lt.s32.totalorder %s504_s22, %s504_s22 }
   0x8   :  { %p511_p3 = por %p510_p2, %p509_p1 }
   0xa   :  { %p512_p4 = pnand %p511_p3, %p505_p0 }
   0xc   :  { %515 = shalt.err (!%p512_p4)
}
   0xd   :  { %s606_s23 = smov 128   ;;  %s607_s24 = smov 8  }
   0xe   :  { %38 = dma.hbm_to_vmem [thread:$0]  %s699_s1, 256, %s33_s19, [#allocation6], %s606_s23, %s606_s23, %s607_s24  }
   0xf   :  { %s524_s27 = scalar_lea.vmem %s21_s21, 256  ;;  %p529_p6 = scmp.lt.s32.totalorder %s21_s21, %s21_s21 }
  0x10   :  { %p525_p5 = scmp.ne.s32.totalorder %s21_s21, %s524_s27  ;;  %p530_p7 = scmp.lt.s32.totalorder %s524_s27, %s524_s27 }
  0x12   :  { %p531_p8 = por %p530_p7, %p529_p6 }
  0x14   :  { %p532_p9 = pnand %p531_p8, %p525_p5 }
  0x16   :  { %535 = shalt.err (!%p532_p9)
}
  0x17   :  { %26 = dma.hbm_to_vmem [thread:$0]  %s698_s0, 256, %s21_s21, [#allocation3], %s606_s23, %s606_s23, %s607_s24  }
  0x18   :  { %s608_s30 = smov [#allocation7]  }
  0x19   :  { %s44_s6 = sshll.u32 %s608_s30, 4  ;;  %s45_s6 = int_to_ptr.vmem [resolvable:$true] %s44_s6 }
  0x1a   :  { %s544_s7 = scalar_lea.vmem %s45_s6, 256  ;;  %p549_p11 = scmp.lt.s32.totalorder %s45_s6, %s45_s6 }
  0x1b   :  { %p545_p10 = scmp.ne.s32.totalorder %s45_s6, %s544_s7  ;;  %p550_p12 = scmp.lt.s32.totalorder %s544_s7, %s544_s7 }
  0x1d   :  { %p551_p13 = por %p550_p12, %p549_p11 }
  0x1f   :  { %p552_p0 = pnand %p551_p13, %p545_p10 }
  0x21   :  { %555 = shalt.err (!%p552_p0)
}
  0x22   :  { %50 = dma.hbm_to_vmem [thread:$0]  %s700_s2, 256, %s45_s6, [#allocation6], %s606_s23, %s606_s23, %s607_s24  }
  0x23   :  { %596 = dma.done.wait [#allocation3], 256  }
  0x24   :  { %597 = vsyncadd [#allocation3], 4294967040 }
  0x25   :  { %598 = dma.done.wait [#allocation6], 512  }
  0x26   :  { %599 = vsyncadd [#allocation6], 4294966784  ;;  %v609_v0 = vmov 0.0   ;;  %vm610_vm0 = vmmov 0   ;;  %vm72_vm1 = vcmask 261120   ;;  %v66_v1 = vld [vmem:[#allocation5] sm:$0xff] }
  0x27   :  { %458 = vmatprep.subr.mxu0 %v609_v0  ;;  %463 = vmatprep.subr.mxu1 %v609_v0  ;;  %v67_v2 = vld [vmem:[#allocation5 + $0x8] sm:$0xff]  ;;  %v64_v3 = vld [vmem:[#allocation2] sm:$0xff]  ;;  %v65_v5 = vld [vmem:[#allocation2 + $0x8] sm:$0xff]  ;;  %v611_v9 = vmov 0   ;;  %vm237_vm6 = vcmask 64512  }
  0x28   :  { %460 = vmatprep.mubr.msk.f32.mxu0 %vm610_vm0, %v609_v0  ;;  %465 = vmatprep.mubr.msk.f32.mxu1 %vm610_vm0, %v609_v0  ;;  %v70_v4 = vmul.f32 0.17677669, %v64_v3  ;;  %v71_v6 = vmul.f32 0.17677669, %v65_v5  ;;  %v225_v7 = vld [vmem:[%s701_s3] sm:$0x3] }
  0x29   :  { %459 = vmatpush3.xpose.msk.msra.mxu0 %vm72_vm1, %v66_v1  ;;  %464 = vmatpush3.xpose.msk.msra.mxu1 %vm72_vm1, %v67_v2  ;;  %v226_v8 = vld [vmem:[%s701_s3 + $0x2] sm:$0x3]  ;;  %vm227_vm2 = vnez %v225_v7  ;;  %v69_v33 = vld [vmem:[#allocation7 + $0x8] sm:$0xff]  ;;  %s612_s3 = smov [#allocation9]  }
  0x2a   :  { %468 = vmatprep.subr.mxu0 %v609_v0  ;;  %473 = vmatprep.subr.mxu1 %v609_v0  ;;  %vm228_vm3 = vnez %v226_v8  ;;  %v229_v10 = vsel %vm227_vm2, 16843009, %v611_v9  ;;  %v68_v32 = vld [vmem:[#allocation7] sm:$0xff]  ;;  %s427_s11 = sshll.u32 %s612_s3, 4  ;;  %s428_s11 = int_to_ptr.vmem [resolvable:$true] %s427_s11 }
  0x2b   :  { %v230_v11 = vsel %vm228_vm3, 16843009, %v611_v9  ;;  %v231_v12 = vunpack.c.0.s8 %v229_v10  ;;  %s556_s12 = scalar_lea.vmem %s428_s11, 256  ;;  %p561_p2 = scmp.lt.s32.totalorder %s428_s11, %s428_s11 }
  0x2c   :  { %461 = vmatmul.mubr.msk.f32.vlgmr.msra.gmra.mxu0 %vm72_vm1, %v70_v4  ;;  %466 = vmatmul.mubr.msk.f32.vlgmr.msra.gmra.mxu1 %vm72_vm1, %v71_v6  ;;  %v232_v13 = vunpack.c.0.s8 %v230_v11  ;;  %p557_p1 = scmp.ne.s32.totalorder %s428_s11, %s556_s12  ;;  %p562_p3 = scmp.lt.s32.totalorder %s556_s12, %s556_s12 }
  0x2d   :  { %470 = vmatprep.mubr.msk.f32.mxu0 %vm610_vm0, %v609_v0  ;;  %475 = vmatprep.mubr.msk.f32.mxu1 %vm610_vm0, %v609_v0  ;;  %vm233_vm4 = vcmp.ne.s32.totalorder %v231_v12, 0 }
  0x2e   :  { %vm234_vm5 = vcmp.ne.s32.totalorder %v232_v13, 0  ;;  %469 = vmatpush3.msra.mxu0 %v68_v32  ;;  %474 = vmatpush3.msra.mxu1 %v69_v33  ;;  %p563_p4 = por %p562_p3, %p561_p2 }
  0x30   :  { %p564_p5 = pnand %p563_p4, %p557_p1 }
  0xec   :  { %v145_v14 = vpop.f32.mrf.mxu0  ;;  %v221_v15 = vpop.f32.mrf.mxu1 }
  0xed   :  { %v235_v16 = vsel %vm233_vm4, -inf, %v145_v14  ;;  %v236_v17 = vsel %vm234_vm5, -inf, %v221_v15 }
  0xee   :  { %v462_v18 = vpop.f32.mrf.mxu0  ;;  %v238_v19 = vsel %vm237_vm6, %v235_v16, -inf  ;;  %v467_v20 = vpop.f32.mrf.mxu1  ;;  %v241_v21 = vsel %vm237_vm6, %v236_v17, -inf }
  0xef   :  { %239 = vmax.xlane.f32.xlu0 %v238_v19 }
  0xf3   :  { %242 = vmax.xlane.f32.xlu0 %v241_v21 }
 0x178   :  { %v240_v22 = vpop.xlane.xlu0 %239 }
 0x179   :  { %v244_v23 = vsub.f32 %v235_v16, %v240_v22 }
 0x17b   :  { %v246_v24 = vmul.f32 1.442695, %v244_v23 }
 0x17c   :  { %v243_v25 = vpop.xlane.xlu0 %242 }
 0x17d   :  { %488 = vpow2.f32 %v246_v24  ;;  %v245_v26 = vsub.f32 %v236_v17, %v243_v25 }
 0x17f   :  { %v248_v27 = vmul.f32 1.442695, %v245_v26 }
 0x181   :  { %490 = vpow2.f32 %v248_v27 }
 0x18a   :  { %v489_v28 = vpop.eup %488 }
 0x18b   :  { %v250_v29 = vsel %vm237_vm6, %v489_v28, 0.0 }
 0x18c   :  { %251 = vadd.xlane.f32.xlu1 %v250_v29 }
 0x18e   :  { %v491_v30 = vpop.eup %490 }
 0x18f   :  { %v253_v31 = vsel %vm237_vm6, %v491_v30, 0.0 }
 0x190   :  { %254 = vadd.xlane.f32.xlu1 %v253_v31 }
 0x215   :  { %v252_v34 = vpop.xlane.xlu1 %251 }
 0x216   :  { %492 = vrcp.f32 %v252_v34 }
 0x219   :  { %v255_v35 = vpop.xlane.xlu1 %254 }
 0x21a   :  { %494 = vrcp.f32 %v255_v35 }
 0x223   :  { %v493_v36 = vpop.eup %492 }
 0x224   :  { %v258_v37 = vmul.f32 %v493_v36, %v489_v28 }
 0x226   :  { %471 = vmatmul.mubr.msk.f32.vlgmr.msra.gmra.mxu0 %vm237_vm6, %v258_v37  ;;  %260 = vst.msk [vmem:[#allocation9] sm:$0xff] %vm237_vm6, %v258_v37 }
 0x227   :  { %v495_v38 = vpop.eup %494 }
 0x228   :  { %v259_v39 = vmul.f32 %v495_v38, %v491_v30 }
 0x22a   :  { %476 = vmatmul.mubr.msk.f32.vlgmr.msra.gmra.mxu1 %vm237_vm6, %v259_v39  ;;  %261 = vst.msk [vmem:[#allocation9 + $0x8] sm:$0xff] %vm237_vm6, %v259_v39 }
 0x22b   :  { %567 = shalt.err (!%p564_p5)
}
 0x22c   :  { %433 = dma.vmem_to_hbm [thread:$0]  %s428_s11, 256, %s703_s5, [#allocation10], %s606_s23, %s606_s23, %s607_s24  }
 0x22d   :  { %s613_s15 = smov [#allocation8]  }
 0x22e   :  { %s415_s16 = sshll.u32 %s613_s15, 4  ;;  %s416_s16 = int_to_ptr.vmem [resolvable:$true] %s415_s16 }
 0x22f   :  { %s576_s17 = scalar_lea.vmem %s416_s16, 256  ;;  %p581_p7 = scmp.lt.s32.totalorder %s416_s16, %s416_s16 }
 0x230   :  { %p577_p6 = scmp.ne.s32.totalorder %s416_s16, %s576_s17  ;;  %p582_p8 = scmp.lt.s32.totalorder %s576_s17, %s576_s17 }
 0x232   :  { %p583_p9 = por %p582_p8, %p581_p7 }
 0x234   :  { %p584_p10 = pnand %p583_p9, %p577_p6 }
 0x2e6   :  { %v331_v40 = vpop.f32.mrf.mxu0 }
 0x2e7   :  { %408 = vst.msk [vmem:[#allocation8] sm:$0xff] %vm72_vm1, %v331_v40 }
 0x2e8   :  { %v472_v41 = vpop.f32.mrf.mxu0 }
 0x2ea   :  { %v404_v42 = vpop.f32.mrf.mxu1 }
 0x2eb   :  { %409 = vst.msk [vmem:[#allocation8 + $0x8] sm:$0xff] %vm72_vm1, %v404_v42 }
 0x2ec   :  { %v477_v43 = vpop.f32.mrf.mxu1 }
 0x2ed   :  { %587 = shalt.err (!%p584_p10)
}
 0x2ee   :  { %421 = dma.vmem_to_hbm [thread:$0]  %s416_s16, 256, %s702_s4, [#allocation4], %s606_s23, %s606_s23, %s607_s24  }
 0x2ef   :  { %600 = dma.done.wait [#allocation4], 256  }
 0x2f0   :  { %601 = vsyncadd [#allocation4], 4294967040 }
 0x2f1   :  { %602 = dma.done.wait [#allocation10], 256  }
 0x2f2   :  { %603 = vsyncadd [#allocation10], 4294967040 }
 0x2f3   :  { %440 = vsyncpa [#allocation3], 1 }
 0x2f4   :  { %441 = vsyncpa [#allocation6], 1 }
 0x2f5   :  { %442 = vsyncpa [#allocation4], 1 }
 0x2f6   :  { %443 = vsyncpa [#allocation10], 1 }

</bundles_post_ra>
